<compile_context>
chip_gen: v7x
topology: tpu7x:2x2x1
jax: 0.10.0
libtpu: 0.0.40
codegen_flags: <defaults>
</compile_context>

<pallas_src>
import jax
import jax.numpy as jnp
from jax.experimental import pallas as pl
from jax.experimental.pallas import tpu as pltpu

_TM_MAX = 2048  # large tiles amortize the ~0.35us per-grid-step overhead


def _two_linear_kernel(x_ref, w1_ref, b1_ref, w2_ref, b2_ref, o1_ref, o2_ref):
    # x: [tm, D], w1: [D, C], b1: [1, C], w2: [D, 1], b2: [1, 1]
    x = x_ref[...]
    acc1 = jnp.dot(x, w1_ref[...], preferred_element_type=jnp.float32)
    acc2 = jnp.dot(x, w2_ref[...], preferred_element_type=jnp.float32)
    o1_ref[...] = (acc1 + b1_ref[...]).astype(o1_ref.dtype)
    o2_ref[...] = (acc2 + b2_ref[...]).astype(o2_ref.dtype)


def _pick_tm(batch):
    """Batch tile size: bounded, sublane-friendly, >=2 blocks for moderate B."""
    if batch <= 256:
        return batch                      # single tiny block (full-dim block is legal)
    if batch <= _TM_MAX:
        half = (batch + 1) // 2           # split so v7x megacore uses both TCs
        return ((half + 7) // 8) * 8      # keep sublane (8) alignment
    return _TM_MAX


def logistic_regression_f1(x, w1, b1, w2, b2):
    """Pallas equivalent of LogisticRegressionF1.forward.

    x:  [B, D] float32
    w1: [D, num_classes], b1: [num_classes]   (fc1 weight stored transposed)
    w2: [D, 1],           b2: [1]             (fc2 weight stored transposed)
    returns (out1 [B, num_classes], out2 [B, 1])
    """
    B, D = x.shape
    C = w1.shape[1]

    b1_2d = b1.reshape(1, C).astype(x.dtype)
    b2_2d = b2.reshape(1, 1).astype(x.dtype)
    w1 = w1.astype(x.dtype)
    w2 = w2.astype(x.dtype)

    tm = _pick_tm(B)
    grid = (pl.cdiv(B, tm),)

    n_out = C + 1
    cost = pl.CostEstimate(
        flops=2 * B * D * n_out,
        transcendentals=0,
        bytes_accessed=4 * (B * D + D * n_out + n_out + B * n_out),
    )

    out1, out2 = pl.pallas_call(
        _two_linear_kernel,
        out_shape=(
            jax.ShapeDtypeStruct((B, C), x.dtype),
            jax.ShapeDtypeStruct((B, 1), x.dtype),
        ),
        grid=grid,
        in_specs=[
            pl.BlockSpec((tm, D), lambda i: (i, 0)),
            pl.BlockSpec((D, C), lambda i: (0, 0)),
            pl.BlockSpec((1, C), lambda i: (0, 0)),
            pl.BlockSpec((D, 1), lambda i: (0, 0)),
            pl.BlockSpec((1, 1), lambda i: (0, 0)),
        ],
        out_specs=(
            pl.BlockSpec((tm, C), lambda i: (i, 0)),
            pl.BlockSpec((tm, 1), lambda i: (i, 0)),
        ),
        compiler_params=pltpu.CompilerParams(
            dimension_semantics=("parallel",),
        ),
        cost_estimate=cost,
    )(x, w1, b1_2d, w2, b2_2d)

    return out1, out2


def _reference(x, w1, b1, w2, b2):
    return x @ w1 + b1, x @ w2 + b2


if __name__ == "__main__":
    input_size = 20
    num_classes = 2
    batch = 8

    key = jax.random.PRNGKey(0)
    kx, kw1, kb1, kw2, kb2 = jax.random.split(key, 5)

    x = jax.random.normal(kx, (batch, input_size), dtype=jnp.float32)
    # Deterministic parameter init (mimics nn.Linear's small uniform init).
    bound = 1.0 / (input_size ** 0.5)
    w1 = jax.random.uniform(kw1, (input_size, num_classes), jnp.float32, -bound, bound)
    b1 = jax.random.uniform(kb1, (num_classes,), jnp.float32, -bound, bound)
    w2 = jax.random.uniform(kw2, (input_size, 1), jnp.float32, -bound, bound)
    b2 = jax.random.uniform(kb2, (1,), jnp.float32, -bound, bound)

    out1, out2 = logistic_regression_f1(x, w1, b1, w2, b2)
    jax.block_until_ready((out1, out2))

    ref1, ref2 = _reference(x, w1, b1, w2, b2)
    assert out1.shape == (batch, num_classes)
    assert out2.shape == (batch, 1)
    assert jnp.allclose(out1, ref1, atol=1e-5), "fc1 mismatch"
    assert jnp.allclose(out2, ref2, atol=1e-5), "fc2 mismatch"

    print("KERNEL_OK")
</pallas_src>

<mosaic_0001>
module attributes {stable_mosaic.version = 11 : i64} {
  func.func @_two_linear_kernel(%arg0: i32, %arg1: memref<8x20xf32, #tpu.memory_space<vmem>>, %arg2: memref<20x2xf32, #tpu.memory_space<vmem>>, %arg3: memref<1x2xf32, #tpu.memory_space<vmem>>, %arg4: memref<20x1xf32, #tpu.memory_space<vmem>>, %arg5: memref<1x1xf32, #tpu.memory_space<vmem>>, %arg6: memref<8x2xf32, #tpu.memory_space<vmem>>, %arg7: memref<8x1xf32, #tpu.memory_space<vmem>>) attributes {dimension_semantics = [#tpu.dimension_semantics<parallel>], iteration_bounds = array<i64: 1>, scalar_prefetch = 0 : i64, scratch_operands = 0 : i64, tpu.core_type = #tpu.core_type<tc>, window_params = [{transform_indices = @transform_0, window_bounds = array<i64: 8, 20>}, {pipeline_mode = #tpu.pipeline_mode<synchronous>, transform_indices = @transform_1, window_bounds = array<i64: 20, 2>}, {pipeline_mode = #tpu.pipeline_mode<synchronous>, transform_indices = @transform_2, window_bounds = array<i64: 1, 2>}, {pipeline_mode = #tpu.pipeline_mode<synchronous>, transform_indices = @transform_3, window_bounds = array<i64: 20, 1>}, {pipeline_mode = #tpu.pipeline_mode<synchronous>, transform_indices = @transform_4, window_bounds = array<i64: 1, 1>}, {transform_indices = @transform_5, window_bounds = array<i64: 8, 2>}, {transform_indices = @transform_6, window_bounds = array<i64: 8, 1>}]} {
    %c0 = arith.constant 0 : index
    %c0_0 = arith.constant 0 : index
    %0 = vector.load %arg1[%c0, %c0_0] : memref<8x20xf32, #tpu.memory_space<vmem>>, vector<8x20xf32>
    %c0_1 = arith.constant 0 : index
    %c0_2 = arith.constant 0 : index
    %1 = vector.load %arg2[%c0_1, %c0_2] : memref<20x2xf32, #tpu.memory_space<vmem>>, vector<20x2xf32>
    %cst = arith.constant dense<0.000000e+00> : vector<8x2xf32>
    %2 = tpu.matmul %0, %1, %cst {dimension_numbers = #tpu.dot_dimension_numbers<[1], [0], [0], [1], [0, 0, 1, 1], [], []>} : vector<8x20xf32>, vector<20x2xf32>, vector<8x2xf32> -> vector<8x2xf32>
    %c0_3 = arith.constant 0 : index
    %c0_4 = arith.constant 0 : index
    %3 = vector.load %arg4[%c0_3, %c0_4] : memref<20x1xf32, #tpu.memory_space<vmem>>, vector<20x1xf32>
    %cst_5 = arith.constant dense<0.000000e+00> : vector<8x1xf32>
    %4 = tpu.matmul %0, %3, %cst_5 {dimension_numbers = #tpu.dot_dimension_numbers<[1], [0], [0], [1], [0, 0, 1, 1], [], []>} : vector<8x20xf32>, vector<20x1xf32>, vector<8x1xf32> -> vector<8x1xf32>
    %c0_6 = arith.constant 0 : index
    %c0_7 = arith.constant 0 : index
    %5 = vector.load %arg3[%c0_6, %c0_7] : memref<1x2xf32, #tpu.memory_space<vmem>>, vector<1x2xf32>
    %6 = vector.broadcast %5 : vector<1x2xf32> to vector<8x2xf32>
    %7 = arith.addf %2, %6 : vector<8x2xf32>
    %c0_8 = arith.constant 0 : index
    %c0_9 = arith.constant 0 : index
    %8 = vector.load %arg6[%c0_8, %c0_9] : memref<8x2xf32, #tpu.memory_space<vmem>>, vector<8x2xf32>
    tpu.vector_store %arg6[%c0_8, %c0_9], %7 {strides = array<i32>} : memref<8x2xf32, #tpu.memory_space<vmem>>, vector<8x2xf32>,
    %c0_10 = arith.constant 0 : index
    %c0_11 = arith.constant 0 : index
    %9 = vector.load %arg5[%c0_10, %c0_11] : memref<1x1xf32, #tpu.memory_space<vmem>>, vector<1x1xf32>
    %10 = vector.broadcast %9 : vector<1x1xf32> to vector<8x1xf32>
    %11 = arith.addf %4, %10 : vector<8x1xf32>
    %c0_12 = arith.constant 0 : index
    %c0_13 = arith.constant 0 : index
    %12 = vector.load %arg7[%c0_12, %c0_13] : memref<8x1xf32, #tpu.memory_space<vmem>>, vector<8x1xf32>
    tpu.vector_store %arg7[%c0_12, %c0_13], %11 {strides = array<i32>} : memref<8x1xf32, #tpu.memory_space<vmem>>, vector<8x1xf32>,
    return
  }
  func.func @transform_0(%arg0: i32) -> (i32, i32) {
    %c0_i32 = arith.constant 0 : i32
    %c0_i32_0 = arith.constant 0 : i32
    return %arg0, %c0_i32 : i32, i32
  }
  func.func @transform_1(%arg0: i32) -> (i32, i32) {
    %c0_i32 = arith.constant 0 : i32
    %c0_i32_0 = arith.constant 0 : i32
    %c0_i32_1 = arith.constant 0 : i32
    return %c0_i32, %c0_i32_0 : i32, i32
  }
  func.func @transform_2(%arg0: i32) -> (i32, i32) {
    %c0_i32 = arith.constant 0 : i32
    %c0_i32_0 = arith.constant 0 : i32
    %c0_i32_1 = arith.constant 0 : i32
    return %c0_i32, %c0_i32_0 : i32, i32
  }
  func.func @transform_3(%arg0: i32) -> (i32, i32) {
    %c0_i32 = arith.constant 0 : i32
    %c0_i32_0 = arith.constant 0 : i32
    %c0_i32_1 = arith.constant 0 : i32
    return %c0_i32, %c0_i32_0 : i32, i32
  }
  func.func @transform_4(%arg0: i32) -> (i32, i32) {
    %c0_i32 = arith.constant 0 : i32
    %c0_i32_0 = arith.constant 0 : i32
    %c0_i32_1 = arith.constant 0 : i32
    return %c0_i32, %c0_i32_0 : i32, i32
  }
  func.func @transform_5(%arg0: i32) -> (i32, i32) {
    %c0_i32 = arith.constant 0 : i32
    %c0_i32_0 = arith.constant 0 : i32
    return %arg0, %c0_i32 : i32, i32
  }
  func.func @transform_6(%arg0: i32) -> (i32, i32) {
    %c0_i32 = arith.constant 0 : i32
    %c0_i32_0 = arith.constant 0 : i32
    return %arg0, %c0_i32 : i32, i32
  }
}

</mosaic_0001>

<bundles_post_ra>
// kernel: tpu_custom_call.1
= control target key start
LH: loop header
LB: loop body
LE: loop exit
PB: predicated region body
PF: predicated region fallthrough
CT: control target
= control target key end

     0   :  { %v249_v0 = vmov 0.0|0.0   ;;  %vm250_vm0 = vmmov 0   ;;  %v251_v6 = vmov 0.0   ;;  %vm42_vm1 = vcmask 1043456   ;;  %s320_s1 = inlined_call_operand.vmem [shape: f32[20,2], index: 1, kind: input, shape index: {}]   ;;  %s321_s3 = inlined_call_operand.vmem [shape: f32[20,1], index: 3, kind: input, shape index: {}]   ;;  %s322_s0 = inlined_call_operand.vmem [shape: f32[8,20], index: 0, kind: input, shape index: {}]   ;;  %s323_s4 = inlined_call_operand.<no memory space> [shape: f32[1,1], index: 4, kind: input, shape index: {}]   ;;  %s324_s2 = inlined_call_operand.vmem [shape: f32[1,2], index: 2, kind: input, shape index: {}]   ;;  %s325_s5 = inlined_call_operand.vmem [shape: f32[8,2], index: 5, kind: output, shape index: {0}]   ;;  %s326_s6 = inlined_call_operand.vmem [shape: f32[8,1], index: 6, kind: output, shape index: {1}]  }
   0x1   :  { %240 = vmatprep.subr.bf16.mxu0 %v249_v0  ;;  %243 = vmatprep.subr.bf16.mxu1 %v249_v0  ;;  %v25_v1 = vld [vmem:[%s320_s1] sm:$0xff]  ;;  %v26_v2 = vld [vmem:[%s320_s1 + $0x8] sm:$0xff]  ;;  %v27_v8 = vld [vmem:[%s320_s1 + $0x10] sm:$0xf]  ;;  %vm38_vm2 = vcmask 162816   ;;  %v12_v11 = vstv %s323_s4  ;;  %vm116_vm3 = vcmask 15360  }
   0x2   :  { %v28_v3 = vld [vmem:[%s321_s3] sm:$0xff]  ;;  %v241_v4 = vpack.c.bf16 %v26_v2, %v25_v1  ;;  %v29_v5 = vld [vmem:[%s321_s3 + $0x8] sm:$0xff]  ;;  %228 = vmatprep.mubr.msk.f32.mxu0 %vm250_vm0, %v251_v6  ;;  %237 = vmatprep.mubr.msk.f32.mxu1 %vm250_vm0, %v251_v6  ;;  %v30_v9 = vld [vmem:[%s321_s3 + $0x10] sm:$0xf]  ;;  %13 = vst [vmem:[#allocation2] sm:$0x1] %v12_v11 }
   0x3   :  { %v244_v7 = vpack.c.bf16 %v29_v5, %v28_v3  ;;  %v24_v10 = vld [vmem:[%s322_s0] sm:$0xff]  ;;  %vm198_vm4 = vcmask 7168  }
   0x4   :  { %242 = vmatpush3.bf16.msra.mxu0 %v241_v4  ;;  %v208_v12 = vld [vmem:[%s324_s2] ss:$0 sm:$0xff] }
   0x5   :  { %245 = vmatpush3.bf16.msra.mxu1 %v244_v7  ;;  %226 = vmatprep.subr.mxu0 %v251_v6 }
   0x6   :  { %235 = vmatprep.subr.mxu1 %v251_v6 }
   0x8   :  { %227 = vmatpush3.msk.msra.mxu0 %vm42_vm1, %v27_v8 }
   0x9   :  { %236 = vmatpush3.msk.msra.mxu1 %vm42_vm1, %v30_v9  ;;  %229 = vmatmul.mubr.msk.f32.vlgmr.msra.gmra.mrb[0].mxu0 %vm38_vm2, %v24_v10  ;;  %v211_v13 = vld [vmem:[#allocation2] ss:$0 sm:$0xff] }
   0xa   :  { %238 = vmatmul.mubr.msk.f32.vlgmr.msra.gmra.mrb[0].mxu1 %vm38_vm2, %v24_v10 }
  0xdc   :  { %v112_v14 = vpop.f32.mrb[0].mxu0 }
  0xdd   :  { %v113_v15 = vadd.f32 %v208_v12, %v112_v14  ;;  %v194_v16 = vpop.f32.mrb[0].mxu1  ;;  %v230_v17 = vpop.f32.mrb[1].mxu0 }
  0xde   :  { %v195_v18 = vadd.f32 %v211_v13, %v194_v16  ;;  %v239_v19 = vpop.f32.mrb[1].mxu1 }
  0xdf   :  { %117 = vst.msk [vmem:[%s325_s5] sm:$0xff] %vm116_vm3, %v113_v15 }
  0xe0   :  { %199 = vst.msk [vmem:[%s326_s6] sm:$0xff] %vm198_vm4, %v195_v18 }

</bundles_post_ra>
